<compile_context>
chip_gen: v5e
topology: v5e:2x2
jax: 0.10.0
libtpu: 0.0.40
codegen_flags: <defaults>
</compile_context>

<pallas_src>
import jax
import jax.numpy as jnp
from jax import lax
from jax.experimental import pallas as pl
from jax.experimental.pallas import tpu as pltpu

_EPS = 1e-5


# ---------------------------------------------------------------------------
# Kernels
# ---------------------------------------------------------------------------
def _conv_stats_kernel(xp_ref, band_ref, stats_ref):
    """Pass 1 (stats only): 3x3 conv as 3 banded matmuls, emit sum / sum-of-squares.

    xp_ref:    (B_blk, H+2, W*Cin)   H-zero-padded input rows for B_blk samples
    band_ref:  (3, W*Cin, W*Cout)    banded weight matrix per vertical tap
    stats_ref: (1, 2, W*Cout)        row 0 = sum over the B_blk*H rows, row 1 = sumsq
    """
    B, Hp2, WCin = xp_ref.shape
    H = Hp2 - 2
    x = xp_ref[...]
    acc = jnp.dot(x[:, 0:H, :].reshape(B * H, WCin), band_ref[0],
                  preferred_element_type=jnp.float32)
    acc = acc + jnp.dot(x[:, 1:H + 1, :].reshape(B * H, WCin), band_ref[1],
                        preferred_element_type=jnp.float32)
    acc = acc + jnp.dot(x[:, 2:H + 2, :].reshape(B * H, WCin), band_ref[2],
                        preferred_element_type=jnp.float32)
    s1 = jnp.sum(acc, axis=0, keepdims=True)          # (1, W*Cout)
    s2 = jnp.sum(acc * acc, axis=0, keepdims=True)    # (1, W*Cout)
    stats_ref[0] = jnp.concatenate([s1, s2], axis=0)  # single (2, W*Cout) store


def _conv_bn_relu_drop_kernel(xp_ref, band_ref, scale_ref, shift_ref, o_ref):
    """Pass 2 (fused): recompute the banded conv, then out = relu(y*scale + shift).

    scale/shift already fold the BN affine, the batch statistics and the Dropout2d
    channel mask (mask >= 0 commutes with ReLU).  One mul + add + max per element.
    """
    B, Hp2, WCin = xp_ref.shape
    H = Hp2 - 2
    x = xp_ref[...]
    acc = jnp.dot(x[:, 0:H, :].reshape(B * H, WCin), band_ref[0],
                  preferred_element_type=jnp.float32)
    acc = acc + jnp.dot(x[:, 1:H + 1, :].reshape(B * H, WCin), band_ref[1],
                        preferred_element_type=jnp.float32)
    acc = acc + jnp.dot(x[:, 2:H + 2, :].reshape(B * H, WCin), band_ref[2],
                        preferred_element_type=jnp.float32)
    y = acc.reshape(B, H, -1)                          # (B_blk, H, W*Cout)
    o_ref[...] = jnp.maximum(y * scale_ref[...] + shift_ref[...], 0.0)


# ---------------------------------------------------------------------------
# Weight preprocessing (per weight update, OUTSIDE the per-step forward)
# ---------------------------------------------------------------------------
def build_band_matrices(w_hwio, W):
    """(3, 3, Cin, Cout) conv weight -> (3, W*Cin, W*Cout) banded matrices.

    B[ky][w'*Cin + ci, w*Cout + co] = w[ky, kx, ci, co] with kx = w' - w + 1 when
    0 <= kx < 3, else 0.  Boundary columns have fewer nonzero taps, which implements
    the W zero-padding of the convolution.  Depends only on the weights: call once
    per weight update, not per forward.
    """
    _, _, Cin, Cout = w_hwio.shape
    wi = jnp.arange(W)[:, None]      # input column  w'
    wo = jnp.arange(W)[None, :]      # output column w
    bands = []
    for ky in range(3):
        m = jnp.zeros((W, Cin, W, Cout), jnp.float32)
        for kx in range(3):
            sel = (wi == wo + (kx - 1)).astype(jnp.float32)            # (W, W)
            m = m + sel[:, None, :, None] * w_hwio[ky, kx][None, :, None, :]
        bands.append(m.reshape(W * Cin, W * Cout))
    return jnp.stack(bands, axis=0)


def _pick_batch_block(N, H, target_rows, max_rows=2048):
    """Samples per grid block: smallest divisor of N whose B_blk*H reaches
    target_rows (keeps extra parallel grid steps when the batch allows), otherwise
    the largest divisor that still fits max_rows."""
    divisors = [d for d in range(1, N + 1) if N % d == 0]
    fitting = [d for d in divisors if d * H <= max_rows] or [1]
    for d in fitting:
        if d * H >= target_rows:
            return d
    return fitting[-1]


# ---------------------------------------------------------------------------
# Forward
# ---------------------------------------------------------------------------
def conv_block_forward(x_nchw, bands, b, gamma, beta, drop_mask_nc, *, eps=_EPS):
    """Training-mode forward of conv_block (Conv3x3 -> BN(train) -> ReLU -> Dropout2d).

    x_nchw:       (N, Cin, H, W) float32
    bands:        (3, W*Cin, W*Cout) from build_band_matrices (precomputed per weight)
    b:            (Cout,) conv bias -- exactly cancelled by training-mode BN mean
                  subtraction, therefore not applied.
    gamma, beta:  (Cout,) BatchNorm affine parameters
    drop_mask_nc: (N, Cout) Dropout2d channel mask, 0 or 1/(1-p)
    returns:      (N, Cout, H, W) float32
    """
    del b  # cancelled by training-mode BN batch-mean subtraction (see docstring)
    N, Cin, H, W = x_nchw.shape
    WCin = W * Cin
    WCout = bands.shape[-1]
    Cout = WCout // W

    # Layout glue (XLA): NCHW -> (N, H, W*Cin) rows, zero-pad H by one row each side.
    # TODO(synk): accept/return NHWC and fold the H pad into the kernel when the
    # surrounding model allows; kept here to preserve the PyTorch NCHW interface.
    x_rows = jnp.transpose(x_nchw, (0, 2, 3, 1)).reshape(N, H, WCin)
    xp = jnp.pad(x_rows, ((0, 0), (1, 1), (0, 0)))

    cparams = pltpu.CompilerParams(
        dimension_semantics=("parallel",),      # batch blocks are independent
        vmem_limit_bytes=32 * 1024 * 1024,      # safe on v7x (64 MiB physical VMEM)
    )

    # ---- pass 1: stats only (per-block per-lane sum / sum-of-squares) ----------
    b1 = _pick_batch_block(N, H, target_rows=256)
    g1 = N // b1
    stats = pl.pallas_call(
        _conv_stats_kernel,
        grid=(g1,),
        in_specs=[
            pl.BlockSpec((b1, H + 2, WCin), lambda n: (n, 0, 0)),
            pl.BlockSpec((3, WCin, WCout), lambda n: (0, 0, 0)),
        ],
        out_specs=pl.BlockSpec((1, 2, WCout), lambda n: (n, 0, 0)),
        out_shape=jax.ShapeDtypeStruct((g1, 2, WCout), jnp.float32),
        compiler_params=cparams,
    )(xp, bands)

    # ---- global BN statistics (tiny reduction, done in XLA) --------------------
    cnt = jnp.float32(N * H * W)
    tot = stats[:, 0, :].reshape(g1, W, Cout).sum(axis=(0, 1))          # (Cout,)
    tot_sq = stats[:, 1, :].reshape(g1, W, Cout).sum(axis=(0, 1))       # (Cout,)
    mean = tot / cnt
    # TODO(synk): E[x^2]-E[x]^2 can cancel when |mean| >> std; switch to a centered
    # second stats pass if that regime matters during training.
    var = jnp.maximum(tot_sq / cnt - mean * mean, 0.0)                  # biased var
    inv_std = lax.rsqrt(var + eps)

    # Fold BN affine + dropout2d mask into one per-(sample, channel) scale/shift.
    scale_c = gamma * inv_std                                           # (Cout,)
    shift_c = beta - mean * scale_c                                     # (Cout,)
    scale_nc = scale_c[None, :] * drop_mask_nc                          # (N, Cout)
    shift_nc = shift_c[None, :] * drop_mask_nc
    # Broadcast to the (W*Cout) lane layout: lane l = w*Cout + co.
    scale_l = jnp.tile(scale_nc, (1, W)).reshape(N, 1, WCout)
    shift_l = jnp.tile(shift_nc, (1, W)).reshape(N, 1, WCout)

    # ---- pass 2: recompute conv + BN scale/shift + ReLU + dropout, fused -------
    b2 = _pick_batch_block(N, H, target_rows=512)
    g2 = N // b2
    out_rows = pl.pallas_call(
        _conv_bn_relu_drop_kernel,
        grid=(g2,),
        in_specs=[
            pl.BlockSpec((b2, H + 2, WCin), lambda n: (n, 0, 0)),
            pl.BlockSpec((3, WCin, WCout), lambda n: (0, 0, 0)),
            pl.BlockSpec((b2, 1, WCout), lambda n: (n, 0, 0)),
            pl.BlockSpec((b2, 1, WCout), lambda n: (n, 0, 0)),
        ],
        out_specs=pl.BlockSpec((b2, H, WCout), lambda n: (n, 0, 0)),
        out_shape=jax.ShapeDtypeStruct((N, H, WCout), jnp.float32),
        compiler_params=cparams,
    )(xp, bands, scale_l, shift_l)

    # Layout glue back to NCHW.
    return jnp.transpose(out_rows.reshape(N, H, W, Cout), (0, 3, 1, 2))


# ---------------------------------------------------------------------------
# Pure-JAX reference
# ---------------------------------------------------------------------------
def _reference(x_nchw, w_hwio, gamma, beta, drop_mask_nc, eps=_EPS):
    """conv (bias cancelled by training BN) -> BN(batch stats) -> ReLU -> Dropout2d."""
    w_oihw = jnp.transpose(w_hwio, (3, 2, 0, 1))
    y = lax.conv_general_dilated(
        x_nchw, w_oihw, window_strides=(1, 1), padding=((1, 1), (1, 1)),
        dimension_numbers=("NCHW", "OIHW", "NCHW"),
        precision=lax.Precision.HIGHEST)
    mean = y.mean(axis=(0, 2, 3), keepdims=True)
    var = ((y - mean) ** 2).mean(axis=(0, 2, 3), keepdims=True)
    y = (y - mean) * lax.rsqrt(var + eps)
    y = y * gamma.reshape(1, -1, 1, 1) + beta.reshape(1, -1, 1, 1)
    y = jnp.maximum(y, 0.0)
    return y * drop_mask_nc[:, :, None, None]


if __name__ == "__main__":
    # Small deterministic setup: N=2, Cin=4, H=W=16, Cout=8, dropout p=0.5.
    N, Cin, H, W, Cout = 2, 4, 16, 16, 8
    p_drop = 0.5

    key = jax.random.PRNGKey(0)
    k_x, k_w, k_b, k_g, k_beta, k_drop = jax.random.split(key, 6)

    x = jax.random.normal(k_x, (N, Cin, H, W), jnp.float32)

    fan_in = Cin * 3 * 3
    w = jax.random.normal(k_w, (3, 3, Cin, Cout), jnp.float32) / jnp.sqrt(fan_in)
    b = 0.01 * jax.random.normal(k_b, (Cout,), jnp.float32)

    gamma = 1.0 + 0.1 * jax.random.normal(k_g, (Cout,), jnp.float32)
    beta = 0.1 * jax.random.normal(k_beta, (Cout,), jnp.float32)

    # Dropout2d channel mask drawn in JAX (deterministic).
    # TODO(synk): torch's RNG stream cannot be reproduced; the semantics match
    # (per-(sample, channel) Bernoulli keep, survivors scaled by 1/(1-p)).
    keep = jax.random.bernoulli(k_drop, 1.0 - p_drop, (N, Cout))
    drop_mask = keep.astype(jnp.float32) / (1.0 - p_drop)

    # Banded weight matrices: depend only on w -> built once per weight update,
    # outside the jitted forward (hoisted off the hot path).
    bands = build_band_matrices(w, W)

    fwd = jax.jit(conv_block_forward)
    out = fwd(x, bands, b, gamma, beta, drop_mask)
    jax.block_until_ready(out)
    assert out.shape == (N, Cout, H, W)

    ref = _reference(x, w, gamma, beta, drop_mask)
    max_err = float(jnp.max(jnp.abs(out - ref)))
    assert max_err < 5e-3, f"max abs error vs reference: {max_err}"

    print("KERNEL_OK")
</pallas_src>

<mosaic_0001>
module attributes {stable_mosaic.version = 11 : i64} {
  func.func @_conv_stats_kernel(%arg0: i32, %arg1: memref<2x18x64xf32, #tpu.memory_space<vmem>>, %arg2: memref<3x64x128xf32, #tpu.memory_space<vmem>>, %arg3: memref<1x2x128xf32, #tpu.memory_space<vmem>>) attributes {dimension_semantics = [#tpu.dimension_semantics<parallel>], iteration_bounds = array<i64: 1>, scalar_prefetch = 0 : i64, scratch_operands = 0 : i64, tpu.core_type = #tpu.core_type<tc>, window_params = [{transform_indices = @transform_0, window_bounds = array<i64: 2, 18, 64>}, {pipeline_mode = #tpu.pipeline_mode<synchronous>, transform_indices = @transform_1, window_bounds = array<i64: 3, 64, 128>}, {transform_indices = @transform_2, window_bounds = array<i64: 1, 2, 128>}]} {
    %c0 = arith.constant 0 : index
    %c0_0 = arith.constant 0 : index
    %c0_1 = arith.constant 0 : index
    %0 = vector.load %arg1[%c0, %c0_0, %c0_1] : memref<2x18x64xf32, #tpu.memory_space<vmem>>, vector<2x18x64xf32>
    %1 = vector.extract_strided_slice %0 {offsets = [0, 0, 0], sizes = [2, 16, 64], strides = [1, 1, 1]} : vector<2x18x64xf32> to vector<2x16x64xf32>
    %2 = vector.shape_cast %1 : vector<2x16x64xf32> to vector<32x64xf32>
    %c0_2 = arith.constant 0 : index
    %c0_3 = arith.constant 0 : index
    %c0_4 = arith.constant 0 : index
    %3 = vector.load %arg2[%c0_2, %c0_3, %c0_4] : memref<3x64x128xf32, #tpu.memory_space<vmem>>, vector<1x64x128xf32>
    %4 = vector.shape_cast %3 : vector<1x64x128xf32> to vector<64x128xf32>
    %cst = arith.constant dense<0.000000e+00> : vector<32x128xf32>
    %5 = tpu.matmul %2, %4, %cst {dimension_numbers = #tpu.dot_dimension_numbers<[1], [0], [0], [1], [0, 0, 1, 1], [], []>} : vector<32x64xf32>, vector<64x128xf32>, vector<32x128xf32> -> vector<32x128xf32>
    %6 = vector.extract_strided_slice %0 {offsets = [0, 1, 0], sizes = [2, 16, 64], strides = [1, 1, 1]} : vector<2x18x64xf32> to vector<2x16x64xf32>
    %7 = vector.shape_cast %6 : vector<2x16x64xf32> to vector<32x64xf32>
    %c1 = arith.constant 1 : index
    %c0_5 = arith.constant 0 : index
    %c0_6 = arith.constant 0 : index
    %8 = vector.load %arg2[%c1, %c0_5, %c0_6] : memref<3x64x128xf32, #tpu.memory_space<vmem>>, vector<1x64x128xf32>
    %9 = vector.shape_cast %8 : vector<1x64x128xf32> to vector<64x128xf32>
    %cst_7 = arith.constant dense<0.000000e+00> : vector<32x128xf32>
    %10 = tpu.matmul %7, %9, %cst_7 {dimension_numbers = #tpu.dot_dimension_numbers<[1], [0], [0], [1], [0, 0, 1, 1], [], []>} : vector<32x64xf32>, vector<64x128xf32>, vector<32x128xf32> -> vector<32x128xf32>
    %11 = arith.addf %5, %10 : vector<32x128xf32>
    %12 = vector.extract_strided_slice %0 {offsets = [0, 2, 0], sizes = [2, 16, 64], strides = [1, 1, 1]} : vector<2x18x64xf32> to vector<2x16x64xf32>
    %13 = vector.shape_cast %12 : vector<2x16x64xf32> to vector<32x64xf32>
    %c2 = arith.constant 2 : index
    %c0_8 = arith.constant 0 : index
    %c0_9 = arith.constant 0 : index
    %14 = vector.load %arg2[%c2, %c0_8, %c0_9] : memref<3x64x128xf32, #tpu.memory_space<vmem>>, vector<1x64x128xf32>
    %15 = vector.shape_cast %14 : vector<1x64x128xf32> to vector<64x128xf32>
    %cst_10 = arith.constant dense<0.000000e+00> : vector<32x128xf32>
    %16 = tpu.matmul %13, %15, %cst_10 {dimension_numbers = #tpu.dot_dimension_numbers<[1], [0], [0], [1], [0, 0, 1, 1], [], []>} : vector<32x64xf32>, vector<64x128xf32>, vector<32x128xf32> -> vector<32x128xf32>
    %17 = arith.addf %11, %16 : vector<32x128xf32>
    %cst_11 = arith.constant dense<0.000000e+00> : vector<128xf32>
    %18 = vector.multi_reduction <add>, %17, %cst_11 [0] : vector<32x128xf32> to vector<128xf32>
    %19 = vector.shape_cast %18 : vector<128xf32> to vector<1x128xf32>
    %20 = arith.mulf %17, %17 : vector<32x128xf32>
    %cst_12 = arith.constant dense<0.000000e+00> : vector<128xf32>
    %21 = vector.multi_reduction <add>, %20, %cst_12 [0] : vector<32x128xf32> to vector<128xf32>
    %22 = vector.shape_cast %21 : vector<128xf32> to vector<1x128xf32>
    %23 = tpu.concatenate %19, %22 in 0 : vector<1x128xf32>, vector<1x128xf32> -> vector<2x128xf32>
    %c0_13 = arith.constant 0 : index
    %c0_14 = arith.constant 0 : index
    %c0_15 = arith.constant 0 : index
    %24 = vector.load %arg3[%c0_13, %c0_14, %c0_15] : memref<1x2x128xf32, #tpu.memory_space<vmem>>, vector<1x2x128xf32>
    %25 = vector.shape_cast %24 : vector<1x2x128xf32> to vector<2x128xf32>
    %26 = vector.shape_cast %23 : vector<2x128xf32> to vector<1x2x128xf32>
    tpu.vector_store %arg3[%c0_13, %c0_14, %c0_15], %26 {strides = array<i32>} : memref<1x2x128xf32, #tpu.memory_space<vmem>>, vector<1x2x128xf32>,
    return
  }
  func.func @transform_0(%arg0: i32) -> (i32, i32, i32) {
    %c0_i32 = arith.constant 0 : i32
    %c0_i32_0 = arith.constant 0 : i32
    %c0_i32_1 = arith.constant 0 : i32
    return %arg0, %c0_i32, %c0_i32_0 : i32, i32, i32
  }
  func.func @transform_1(%arg0: i32) -> (i32, i32, i32) {
    %c0_i32 = arith.constant 0 : i32
    %c0_i32_0 = arith.constant 0 : i32
    %c0_i32_1 = arith.constant 0 : i32
    %c0_i32_2 = arith.constant 0 : i32
    return %c0_i32, %c0_i32_0, %c0_i32_1 : i32, i32, i32
  }
  func.func @transform_2(%arg0: i32) -> (i32, i32, i32) {
    %c0_i32 = arith.constant 0 : i32
    %c0_i32_0 = arith.constant 0 : i32
    %c0_i32_1 = arith.constant 0 : i32
    return %arg0, %c0_i32, %c0_i32_0 : i32, i32, i32
  }
}

module attributes {stable_mosaic.version = 11 : i64} {
  func.func @_conv_bn_relu_drop_kernel(%arg0: i32, %arg1: memref<2x18x64xf32, #tpu.memory_space<vmem>>, %arg2: memref<3x64x128xf32, #tpu.memory_space<vmem>>, %arg3: memref<2x1x128xf32, #tpu.memory_space<vmem>>, %arg4: memref<2x1x128xf32, #tpu.memory_space<vmem>>, %arg5: memref<2x16x128xf32, #tpu.memory_space<vmem>>) attributes {dimension_semantics = [#tpu.dimension_semantics<parallel>], iteration_bounds = array<i64: 1>, scalar_prefetch = 0 : i64, scratch_operands = 0 : i64, tpu.core_type = #tpu.core_type<tc>, window_params = [{transform_indices = @transform_0, window_bounds = array<i64: 2, 18, 64>}, {pipeline_mode = #tpu.pipeline_mode<synchronous>, transform_indices = @transform_1, window_bounds = array<i64: 3, 64, 128>}, {transform_indices = @transform_2, window_bounds = array<i64: 2, 1, 128>}, {transform_indices = @transform_3, window_bounds = array<i64: 2, 1, 128>}, {transform_indices = @transform_4, window_bounds = array<i64: 2, 16, 128>}]} {
    %c0 = arith.constant 0 : index
    %c0_0 = arith.constant 0 : index
    %c0_1 = arith.constant 0 : index
    %0 = vector.load %arg1[%c0, %c0_0, %c0_1] : memref<2x18x64xf32, #tpu.memory_space<vmem>>, vector<2x18x64xf32>
    %1 = vector.extract_strided_slice %0 {offsets = [0, 0, 0], sizes = [2, 16, 64], strides = [1, 1, 1]} : vector<2x18x64xf32> to vector<2x16x64xf32>
    %2 = vector.shape_cast %1 : vector<2x16x64xf32> to vector<32x64xf32>
    %c0_2 = arith.constant 0 : index
    %c0_3 = arith.constant 0 : index
    %c0_4 = arith.constant 0 : index
    %3 = vector.load %arg2[%c0_2, %c0_3, %c0_4] : memref<3x64x128xf32, #tpu.memory_space<vmem>>, vector<1x64x128xf32>
    %4 = vector.shape_cast %3 : vector<1x64x128xf32> to vector<64x128xf32>
    %cst = arith.constant dense<0.000000e+00> : vector<32x128xf32>
    %5 = tpu.matmul %2, %4, %cst {dimension_numbers = #tpu.dot_dimension_numbers<[1], [0], [0], [1], [0, 0, 1, 1], [], []>} : vector<32x64xf32>, vector<64x128xf32>, vector<32x128xf32> -> vector<32x128xf32>
    %6 = vector.extract_strided_slice %0 {offsets = [0, 1, 0], sizes = [2, 16, 64], strides = [1, 1, 1]} : vector<2x18x64xf32> to vector<2x16x64xf32>
    %7 = vector.shape_cast %6 : vector<2x16x64xf32> to vector<32x64xf32>
    %c1 = arith.constant 1 : index
    %c0_5 = arith.constant 0 : index
    %c0_6 = arith.constant 0 : index
    %8 = vector.load %arg2[%c1, %c0_5, %c0_6] : memref<3x64x128xf32, #tpu.memory_space<vmem>>, vector<1x64x128xf32>
    %9 = vector.shape_cast %8 : vector<1x64x128xf32> to vector<64x128xf32>
    %cst_7 = arith.constant dense<0.000000e+00> : vector<32x128xf32>
    %10 = tpu.matmul %7, %9, %cst_7 {dimension_numbers = #tpu.dot_dimension_numbers<[1], [0], [0], [1], [0, 0, 1, 1], [], []>} : vector<32x64xf32>, vector<64x128xf32>, vector<32x128xf32> -> vector<32x128xf32>
    %11 = arith.addf %5, %10 : vector<32x128xf32>
    %12 = vector.extract_strided_slice %0 {offsets = [0, 2, 0], sizes = [2, 16, 64], strides = [1, 1, 1]} : vector<2x18x64xf32> to vector<2x16x64xf32>
    %13 = vector.shape_cast %12 : vector<2x16x64xf32> to vector<32x64xf32>
    %c2 = arith.constant 2 : index
    %c0_8 = arith.constant 0 : index
    %c0_9 = arith.constant 0 : index
    %14 = vector.load %arg2[%c2, %c0_8, %c0_9] : memref<3x64x128xf32, #tpu.memory_space<vmem>>, vector<1x64x128xf32>
    %15 = vector.shape_cast %14 : vector<1x64x128xf32> to vector<64x128xf32>
    %cst_10 = arith.constant dense<0.000000e+00> : vector<32x128xf32>
    %16 = tpu.matmul %13, %15, %cst_10 {dimension_numbers = #tpu.dot_dimension_numbers<[1], [0], [0], [1], [0, 0, 1, 1], [], []>} : vector<32x64xf32>, vector<64x128xf32>, vector<32x128xf32> -> vector<32x128xf32>
    %17 = arith.addf %11, %16 : vector<32x128xf32>
    %18 = vector.shape_cast %17 : vector<32x128xf32> to vector<2x16x128xf32>
    %c0_11 = arith.constant 0 : index
    %c0_12 = arith.constant 0 : index
    %c0_13 = arith.constant 0 : index
    %19 = vector.load %arg3[%c0_11, %c0_12, %c0_13] : memref<2x1x128xf32, #tpu.memory_space<vmem>>, vector<2x1x128xf32>
    %20 = vector.broadcast %19 : vector<2x1x128xf32> to vector<2x16x128xf32>
    %21 = arith.mulf %18, %20 : vector<2x16x128xf32>
    %c0_14 = arith.constant 0 : index
    %c0_15 = arith.constant 0 : index
    %c0_16 = arith.constant 0 : index
    %22 = vector.load %arg4[%c0_14, %c0_15, %c0_16] : memref<2x1x128xf32, #tpu.memory_space<vmem>>, vector<2x1x128xf32>
    %23 = vector.broadcast %22 : vector<2x1x128xf32> to vector<2x16x128xf32>
    %24 = arith.addf %21, %23 : vector<2x16x128xf32>
    %cst_17 = arith.constant 0.000000e+00 : f32
    %25 = vector.broadcast %cst_17 : f32 to vector<2x16x128xf32>
    %26 = arith.maximumf %24, %25 : vector<2x16x128xf32>
    %c0_18 = arith.constant 0 : index
    %c0_19 = arith.constant 0 : index
    %c0_20 = arith.constant 0 : index
    %27 = vector.load %arg5[%c0_18, %c0_19, %c0_20] : memref<2x16x128xf32, #tpu.memory_space<vmem>>, vector<2x16x128xf32>
    tpu.vector_store %arg5[%c0_18, %c0_19, %c0_20], %26 {strides = array<i32>} : memref<2x16x128xf32, #tpu.memory_space<vmem>>, vector<2x16x128xf32>,
    return
  }
  func.func @transform_0(%arg0: i32) -> (i32, i32, i32) {
    %c0_i32 = arith.constant 0 : i32
    %c0_i32_0 = arith.constant 0 : i32
    %c0_i32_1 = arith.constant 0 : i32
    return %arg0, %c0_i32, %c0_i32_0 : i32, i32, i32
  }
  func.func @transform_1(%arg0: i32) -> (i32, i32, i32) {
    %c0_i32 = arith.constant 0 : i32
    %c0_i32_0 = arith.constant 0 : i32
    %c0_i32_1 = arith.constant 0 : i32
    %c0_i32_2 = arith.constant 0 : i32
    return %c0_i32, %c0_i32_0, %c0_i32_1 : i32, i32, i32
  }
  func.func @transform_2(%arg0: i32) -> (i32, i32, i32) {
    %c0_i32 = arith.constant 0 : i32
    %c0_i32_0 = arith.constant 0 : i32
    %c0_i32_1 = arith.constant 0 : i32
    return %arg0, %c0_i32, %c0_i32_0 : i32, i32, i32
  }
  func.func @transform_3(%arg0: i32) -> (i32, i32, i32) {
    %c0_i32 = arith.constant 0 : i32
    %c0_i32_0 = arith.constant 0 : i32
    %c0_i32_1 = arith.constant 0 : i32
    return %arg0, %c0_i32, %c0_i32_0 : i32, i32, i32
  }
  func.func @transform_4(%arg0: i32) -> (i32, i32, i32) {
    %c0_i32 = arith.constant 0 : i32
    %c0_i32_0 = arith.constant 0 : i32
    %c0_i32_1 = arith.constant 0 : i32
    return %arg0, %c0_i32, %c0_i32_0 : i32, i32, i32
  }
}

</mosaic_0001>

<bundles_post_ra>
// kernel: squeeze.2
= control target key start
LH: loop header
LB: loop body
LE: loop exit
PB: predicated region body
PF: predicated region fallthrough
CT: control target
= control target key end

     0   :  { %s130_s8 = smov 120   ;;  %s131_s9 = smov 88   ;;  %vm7_vm0 = vcmask 64512   ;;  %s221_s0 = inlined_call_operand.vmem [shape: f32[128], index: 0, kind: input, shape index: {}]   ;;  %s222_s1 = inlined_call_operand.vmem [shape: f32[16,8], index: 1, kind: output, shape index: {}]  }
   0x1   :  { %v4_v0 = vld [vmem:[%s221_s0] sm:$0x1]  ;;  %s129_s0 = smov 104   ;;  %s132_s10 = smov 96  }
   0x2   :  { %5 = vst [vmem:[#allocation0] sm:$0x1] %v4_v0  ;;  %s133_s11 = smov 112   ;;  %s134_s12 = smov 80  }
   0x3   :  { %s135_s13 = smov 64   ;;  %s136_s14 = smov 72  }
   0x4   :  { %s137_s15 = smov 56   ;;  %s138_s16 = smov 40  }
   0x5   :  { %s139_s17 = smov 48   ;;  %s140_s18 = smov 32  }
   0x6   :  { %s141_s19 = smov 16   ;;  %s142_s20 = smov 24  }
   0x7   :  { %s143_s21 = smov 8  }
   0x9   :  { %v21_v1 = vld [vmem:[#allocation0] sm:$0x1]  }
   0xa   :  { %v9_v2 = vld [vmem:[#allocation0] sm:$0x1]   ;;  %22 = vrot.lane.b32.xlu1 %v21_v1, %s129_s0 }
   0xb   :  { %10 = vrot.lane.b32.xlu0 %v9_v2, %s130_s8  ;;  %v33_v3 = vld [vmem:[#allocation0] sm:$0x1]  }
   0xc   :  { %34 = vrot.lane.b32.xlu2 %v33_v3, %s131_s9  ;;  %v27_v4 = vld [vmem:[#allocation0] sm:$0x1]  }
   0xd   :  { %v15_v5 = vld [vmem:[#allocation0] sm:$0x1]  }
   0xe   :  { %v39_v6 = vld [vmem:[#allocation0] sm:$0x1]  }
   0xf   :  { %v51_v7 = vld [vmem:[#allocation0] sm:$0x1]  }
  0x10   :  { %v45_v8 = vld [vmem:[#allocation0] sm:$0x1]  }
  0x11   :  { %v57_v9 = vld [vmem:[#allocation0] sm:$0x1]  }
  0x12   :  { %28 = vrot.lane.b32.xlu1 %v27_v4, %s132_s10  ;;  %v69_v10 = vld [vmem:[#allocation0] sm:$0x1]  }
  0x13   :  { %16 = vrot.lane.b32.xlu0 %v15_v5, %s133_s11  ;;  %v63_v11 = vld [vmem:[#allocation0] sm:$0x1]  }
  0x14   :  { %40 = vrot.lane.b32.xlu2 %v39_v6, %s134_s12  ;;  %v75_v12 = vld [vmem:[#allocation0] sm:$0x1]  }
  0x15   :  { %v87_v13 = vld [vmem:[#allocation0] sm:$0x1]  }
  0x16   :  { %v81_v14 = vld [vmem:[#allocation0] sm:$0x1]  }
  0x17   :  { %v93_v15 = vld [vmem:[#allocation0] sm:$0x1]  }
  0x18   :  { %v6_v21 = vld [vmem:[#allocation0] sm:$0x1]  }
  0x19   :  { %8 = vst.msk [vmem:[%s222_s1] sm:$0x1] %vm7_vm0, %v6_v21  }
  0x1a   :  { %52 = vrot.lane.b32.xlu1 %v51_v7, %s135_s13 }
  0x1b   :  { %46 = vrot.lane.b32.xlu0 %v45_v8, %s136_s14 }
  0x1c   :  { %58 = vrot.lane.b32.xlu2 %v57_v9, %s137_s15 }
  0x22   :  { %70 = vrot.lane.b32.xlu1 %v69_v10, %s138_s16 }
  0x23   :  { %64 = vrot.lane.b32.xlu0 %v63_v11, %s139_s17 }
  0x24   :  { %76 = vrot.lane.b32.xlu2 %v75_v12, %s140_s18 }
  0x2a   :  { %88 = vrot.lane.b32.xlu1 %v87_v13, %s141_s19 }
  0x2b   :  { %82 = vrot.lane.b32.xlu0 %v81_v14, %s142_s20 }
  0x2c   :  { %94 = vrot.lane.b32.xlu2 %v93_v15, %s143_s21 }
  0x66   :  { %v35_v16 = vpop.permute.xlu2 %34  }
  0x67   :  { %103 = vst.msk [vmem:[%s222_s1 + $0x5] sm:$0x1] %vm7_vm0, %v35_v16  }
  0x6e   :  { %v41_v17 = vpop.permute.xlu2 %40  }
  0x6f   :  { %104 = vst.msk [vmem:[%s222_s1 + $0x6] sm:$0x1] %vm7_vm0, %v41_v17  }
  0x76   :  { %v59_v18 = vpop.permute.xlu2 %58  }
  0x77   :  { %107 = vst.msk [vmem:[%s222_s1 + $0x9] sm:$0x1] %vm7_vm0, %v59_v18  }
  0x7c   :  { %v23_v19 = vpop.permute.xlu1 %22  }
  0x7d   :  { %v11_v20 = vpop.permute.xlu0 %10   ;;  %101 = vst.msk [vmem:[%s222_s1 + $0x3] sm:$0x1] %vm7_vm0, %v23_v19  }
  0x7e   :  { %99 = vst.msk [vmem:[%s222_s1 + $0x1] sm:$0x1] %vm7_vm0, %v11_v20   ;;  %v77_v22 = vpop.permute.xlu2 %76  }
  0x7f   :  { %110 = vst.msk [vmem:[%s222_s1 + $0xc] sm:$0x1] %vm7_vm0, %v77_v22  }
  0x84   :  { %v29_v23 = vpop.permute.xlu1 %28  }
  0x85   :  { %v17_v24 = vpop.permute.xlu0 %16   ;;  %102 = vst.msk [vmem:[%s222_s1 + $0x4] sm:$0x1] %vm7_vm0, %v29_v23  }
  0x86   :  { %100 = vst.msk [vmem:[%s222_s1 + $0x2] sm:$0x1] %vm7_vm0, %v17_v24   ;;  %v95_v25 = vpop.permute.xlu2 %94  }
  0x87   :  { %113 = vst.msk [vmem:[%s222_s1 + $0xf] sm:$0x1] %vm7_vm0, %v95_v25  }
  0x8c   :  { %v53_v26 = vpop.permute.xlu1 %52  }
  0x8d   :  { %v47_v27 = vpop.permute.xlu0 %46   ;;  %106 = vst.msk [vmem:[%s222_s1 + $0x8] sm:$0x1] %vm7_vm0, %v53_v26  }
  0x8e   :  { %105 = vst.msk [vmem:[%s222_s1 + $0x7] sm:$0x1] %vm7_vm0, %v47_v27  }
  0x94   :  { %v71_v28 = vpop.permute.xlu1 %70  }
  0x95   :  { %v65_v29 = vpop.permute.xlu0 %64   ;;  %109 = vst.msk [vmem:[%s222_s1 + $0xb] sm:$0x1] %vm7_vm0, %v71_v28  }
  0x96   :  { %108 = vst.msk [vmem:[%s222_s1 + $0xa] sm:$0x1] %vm7_vm0, %v65_v29  }
  0x9c   :  { %v89_v30 = vpop.permute.xlu1 %88  }
  0x9d   :  { %v83_v31 = vpop.permute.xlu0 %82   ;;  %112 = vst.msk [vmem:[%s222_s1 + $0xe] sm:$0x1] %vm7_vm0, %v89_v30  }
  0x9e   :  { %111 = vst.msk [vmem:[%s222_s1 + $0xd] sm:$0x1] %vm7_vm0, %v83_v31  }

// kernel: conv_block_forward.2
= control target key start
LH: loop header
LB: loop body
LE: loop exit
PB: predicated region body
PF: predicated region fallthrough
CT: control target
= control target key end

     0   :  { %vm126_vm0 = vcmask 1045504   ;;  %vm31_vm1 = vcmask 1046528   ;;  %vm51_vm2 = vcmask 523264   ;;  %vm209_vm3 = vcmask 1040384   ;;  %s380_s1 = inlined_call_operand.vmem [shape: f32[3,64,128], index: 1, kind: input, shape index: {}]   ;;  %s381_s0 = inlined_call_operand.vmem [shape: f32[2,18,64], index: 0, kind: input, shape index: {}]   ;;  %s382_s2 = inlined_call_operand.vmem [shape: f32[1,2,128], index: 2, kind: output, shape index: {}]  }
   0x1   :  { %v239_v0 = vld [vmem:[%s380_s1 + $0xb8] sm:$0xff]  ;;  %v238_v1 = vld [vmem:[%s380_s1 + $0xb0] sm:$0xff]  ;;  %v237_v5 = vld [vmem:[%s380_s1 + $0xa8] sm:$0xff] }
   0x2   :  { %v223_v2 = vld [vmem:[%s380_s1 + $0x78] sm:$0xff]  ;;  %162 = vmatpush.msra.mxu2 %v239_v0  ;;  %v222_v4 = vld [vmem:[%s380_s1 + $0x70] sm:$0xff]  ;;  %v221_v7 = vld [vmem:[%s380_s1 + $0x68] sm:$0xff] }
   0x3   :  { %68 = vmatpush.msra.mxu0 %v223_v2  ;;  %v24_v3 = vld [vmem:[%s380_s1 + $0x38] sm:$0xff]  ;;  %244 = vmatpush.msra.mxu3 %v223_v2  ;;  %v23_v6 = vld [vmem:[%s380_s1 + $0x30] sm:$0xff]  ;;  %v22_v8 = vld [vmem:[%s380_s1 + $0x28] sm:$0xff] }
   0x4   :  { %105 = vmatpush.msra.mxu1 %v24_v3  ;;  %163 = vmatpush.msra.mxu2 %v238_v1  ;;  %v236_v9 = vld [vmem:[%s380_s1 + $0xa0] sm:$0xff]  ;;  %v235_v12 = vld [vmem:[%s380_s1 + $0x98] sm:$0xff]  ;;  %v12_v16 = vld [vmem:[%s381_s0 + $0x8] sm:$0xff] }
   0x5   :  { %69 = vmatpush.msra.mxu0 %v222_v4  ;;  %245 = vmatpush.msra.mxu3 %v222_v4  ;;  %v220_v10 = vld [vmem:[%s380_s1 + $0x60] sm:$0xff]  ;;  %v219_v13 = vld [vmem:[%s380_s1 + $0x58] sm:$0xff]  ;;  %v234_v17 = vld [vmem:[%s380_s1 + $0x90] sm:$0xff]  ;;  %v128_v21 = vrot.slane %v12_v16, 2  ;;  %v33_v26 = vrot.slane %v12_v16, 1 }
   0x6   :  { %106 = vmatpush.msra.mxu1 %v23_v6  ;;  %164 = vmatpush.msra.mxu2 %v237_v5  ;;  %v21_v11 = vld [vmem:[%s380_s1 + $0x20] sm:$0xff]  ;;  %v20_v15 = vld [vmem:[%s380_s1 + $0x18] sm:$0xff]  ;;  %v218_v18 = vld [vmem:[%s380_s1 + $0x50] sm:$0xff] }
   0x7   :  { %70 = vmatpush.msra.mxu0 %v221_v7  ;;  %246 = vmatpush.msra.mxu3 %v221_v7  ;;  %v11_v14 = vld [vmem:[%s381_s0] sm:$0xff]  ;;  %v19_v19 = vld [vmem:[%s380_s1 + $0x10] sm:$0xff]  ;;  %v233_v23 = vld [vmem:[%s380_s1 + $0x88] sm:$0xff] }
   0x8   :  { %107 = vmatpush.msra.mxu1 %v22_v8  ;;  %165 = vmatpush.msra.mxu2 %v236_v9  ;;  %v127_v20 = vrot.slane %v11_v14, 2  ;;  %v13_v22 = vld [vmem:[%s381_s0 + $0x10] sm:$0x3]  ;;  %v217_v24 = vld [vmem:[%s380_s1 + $0x48] sm:$0xff]  ;;  %v32_v25 = vrot.slane %v11_v14, 1  ;;  %v232_v28 = vld [vmem:[%s380_s1 + $0x80] sm:$0xff] }
   0x9   :  { %71 = vmatpush.msra.mxu0 %v220_v10  ;;  %247 = vmatpush.msra.mxu3 %v220_v10  ;;  %v18_v27 = vld [vmem:[%s380_s1 + $0x8] sm:$0xff]  ;;  %v216_v29 = vld [vmem:[%s380_s1 + $0x40] sm:$0xff]  ;;  %v35_v30 = vrot.slane %v13_v22, 1  ;;  %v130_v35 = vrot.slane %v13_v22, 2  ;;  %v14_v36 = vld [vmem:[%s381_s0 + $0x18] sm:$0xff] }
   0xa   :  { %108 = vmatpush.msra.mxu1 %v21_v11  ;;  %166 = vmatpush.msra.mxu2 %v235_v12  ;;  %v129_v31 = vsel %vm126_vm0, %v127_v20, %v128_v21  ;;  %v17_v32 = vld [vmem:[%s380_s1] sm:$0xff]  ;;  %v34_v33 = vsel %vm31_vm1, %v32_v25, %v33_v26  ;;  %v37_v38 = vrot.slane %v14_v36, 1  ;;  %v132_v42 = vrot.slane %v14_v36, 2  ;;  %v16_v44 = vld [vmem:[%s381_s0 + $0x28] sm:$0x3] }
   0xb   :  { %72 = vmatpush.msra.mxu0 %v219_v13  ;;  %248 = vmatpush.msra.mxu3 %v219_v13  ;;  %v36_v34 = vsel %vm31_vm1, %v33_v26, %v35_v30  ;;  %v15_v37 = vld [vmem:[%s381_s0 + $0x20] sm:$0xff]  ;;  %v131_v40 = vsel %vm126_vm0, %v128_v21, %v130_v35  ;;  %v40_v45 = vrot.slane %v16_v44, 1  ;;  %v135_v48 = vrot.slane %v16_v44, 2 }
   0xc   :  { %109 = vmatpush.msra.mxu1 %v20_v15  ;;  %167 = vmatpush.msra.mxu2 %v234_v17  ;;  %v38_v39 = vrot.slane %v15_v37, 1  ;;  %v133_v43 = vrot.slane %v15_v37, 2 }
   0xd   :  { %73 = vmatpush.msra.mxu0 %v218_v18  ;;  %249 = vmatpush.msra.mxu3 %v218_v18 }
   0xe   :  { %110 = vmatpush.msra.mxu1 %v19_v19  ;;  %168 = vmatpush.msra.mxu2 %v233_v23  ;;  %v39_v41 = vsel %vm31_vm1, %v37_v38, %v38_v39  ;;  %v134_v46 = vsel %vm126_vm0, %v132_v42, %v133_v43  ;;  %v41_v47 = vsel %vm31_vm1, %v38_v39, %v40_v45 }
   0xf   :  { %74 = vmatpush.msra.mxu0 %v217_v24  ;;  %250 = vmatpush.msra.mxu3 %v217_v24  ;;  %v136_v49 = vsel %vm126_vm0, %v133_v43, %v135_v48 }
  0x10   :  { %111 = vmatpush.msra.mxu1 %v18_v27  ;;  %169 = vmatpush.msra.mxu2 %v232_v28 }
  0x11   :  { %75 = vmatpush.msra.mxu0 %v216_v29  ;;  %240 = vmatmul.msk.f32.vlgmr.msra.gmra.mxu2 %vm51_vm2, %v129_v31 }
  0x12   :  { %112 = vmatpush.msra.mxu1 %v17_v32  ;;  %224 = vmatmul.msk.f32.vlgmr.msra.gmra.mxu0 %vm51_vm2, %v34_v33 }
  0x13   :  { %228 = vmatmul.msk.f32.vlgmr.msra.gmra.mxu1 %vm51_vm2, %v11_v14  ;;  %251 = vmatpush.msra.mxu3 %v216_v29 }
  0x14   :  { %225 = vmatmul.msk.f32.vlgmr.msra.gmra.mxu3 %vm51_vm2, %v36_v34 }
  0x19   :  { %241 = vmatmul.msk.f32.gmra.mxu2 %vm51_vm2, %v131_v40 }
  0x1b   :  { %229 = vmatmul.msk.f32.gmra.mxu1 %vm51_vm2, %v12_v16 }
  0x1c   :  { %226 = vmatmul.msk.f32.gmra.mxu3 %vm51_vm2, %v39_v41 }
  0x21   :  { %242 = vmatmul.msk.f32.gmra.mxu2 %vm51_vm2, %v134_v46 }
  0x23   :  { %230 = vmatmul.msk.f32.gmra.mxu1 %vm51_vm2, %v14_v36 }
  0x24   :  { %227 = vmatmul.msk.f32.gmra.mxu3 %vm51_vm2, %v41_v47 }
  0x29   :  { %243 = vmatmul.msk.f32.gmra.mxu2 %vm51_vm2, %v136_v49 }
  0x2b   :  { %231 = vmatmul.msk.f32.gmra.mxu1 %vm51_vm2, %v15_v37 }
  0x8f   :  { %v77_v57 = vpop.f32.mrf.mxu0 }
  0x90   :  { %v114_v50 = vpop.f32.mrf.mxu1 }
  0x91   :  { %v115_v59 = vadd.f32 %v114_v50, %v77_v57 }
  0x94   :  { %v171_v51 = vpop.f32.mrf.mxu2 }
  0x95   :  { %v183_v63 = vadd.f32 %v171_v51, %v115_v59 }
  0x97   :  { %v80_v52 = vpop.f32.mrf.mxu3  ;;  %v196_v5 = vmul.f32 %v183_v63, %v183_v63 }
  0x98   :  { %v117_v53 = vpop.f32.mrf.mxu1 }
  0x99   :  { %v118_v58 = vadd.f32 %v117_v53, %v80_v52 }
  0x9c   :  { %v174_v54 = vpop.f32.mrf.mxu2 }
  0x9d   :  { %v184_v62 = vadd.f32 %v174_v54, %v118_v58 }
  0x9f   :  { %v83_v55 = vpop.f32.mrf.mxu3  ;;  %v197_v3 = vmul.f32 %v184_v62, %v184_v62  ;;  %v187_v6 = vadd.f32 %v184_v62, %v183_v63 }
  0xa0   :  { %v120_v56 = vpop.f32.mrf.mxu1 }
  0xa1   :  { %v121_v60 = vadd.f32 %v120_v56, %v83_v55  ;;  %v200_v9 = vadd.f32 %v197_v3, %v196_v5 }
  0xa4   :  { %v177_v61 = vpop.f32.mrf.mxu2 }
  0xa5   :  { %v185_v0 = vadd.f32 %v177_v61, %v121_v60 }
  0xa7   :  { %v86_v1 = vpop.f32.mrf.mxu3  ;;  %v198_v7 = vmul.f32 %v185_v0, %v185_v0  ;;  %v188_v10 = vadd.f32 %v187_v6, %v185_v0 }
  0xa8   :  { %v123_v2 = vpop.f32.mrf.mxu1 }
  0xa9   :  { %v124_v4 = vadd.f32 %v123_v2, %v86_v1  ;;  %v201_v12 = vadd.f32 %v200_v9, %v198_v7 }
  0xac   :  { %v180_v8 = vpop.f32.mrf.mxu2 }
  0xad   :  { %v186_v11 = vadd.f32 %v180_v8, %v124_v4 }
  0xaf   :  { %v189_v13 = vadd.f32 %v188_v10, %v186_v11  ;;  %v199_v14 = vmul.f32 %v186_v11, %v186_v11 }
  0xb1   :  { %v190_v15 = vrot.slane %v189_v13, 4  ;;  %v202_v16 = vadd.f32 %v201_v12, %v199_v14 }
  0xb3   :  { %v191_v17 = vadd.f32 %v190_v15, %v189_v13  ;;  %v203_v18 = vrot.slane %v202_v16, 4 }
  0xb5   :  { %v192_v19 = vrot.slane %v191_v17, 2  ;;  %v204_v20 = vadd.f32 %v203_v18, %v202_v16 }
  0xb7   :  { %v193_v21 = vadd.f32 %v192_v19, %v191_v17  ;;  %v205_v22 = vrot.slane %v204_v20, 2 }
  0xb9   :  { %v194_v23 = vrot.slane %v193_v21, 1  ;;  %v206_v24 = vadd.f32 %v205_v22, %v204_v20 }
  0xbb   :  { %v207_v25 = vrot.slane %v206_v24, 1  ;;  %v195_v26 = vadd.f32 %v194_v23, %v193_v21 }
  0xbd   :  { %v208_v27 = vadd.f32 %v207_v25, %v206_v24 }
  0xbf   :  { %v210_v28 = vsel %vm209_vm3, %v195_v26, %v208_v27 }
  0xc0   :  { %211 = vst [vmem:[%s382_s2] sm:$0x3] %v210_v28 }

// kernel: conv_block_forward.3
= control target key start
LH: loop header
LB: loop body
LE: loop exit
PB: predicated region body
PF: predicated region fallthrough
CT: control target
= control target key end

     0   :  { %vm132_vm0 = vcmask 1045504   ;;  %vm37_vm1 = vcmask 1046528   ;;  %vm57_vm2 = vcmask 523264   ;;  %s428_s1 = inlined_call_operand.vmem [shape: f32[3,64,128], index: 1, kind: input, shape index: {}]   ;;  %s429_s0 = inlined_call_operand.vmem [shape: f32[2,18,64], index: 0, kind: input, shape index: {}]   ;;  %s430_s2 = inlined_call_operand.vmem [shape: f32[2,1,128], index: 2, kind: input, shape index: {}]   ;;  %s431_s3 = inlined_call_operand.vmem [shape: f32[2,1,128], index: 3, kind: input, shape index: {}]   ;;  %s432_s4 = inlined_call_operand.vmem [shape: f32[2,16,128], index: 4, kind: output, shape index: {}]  }
   0x1   :  { %v252_v0 = vld [vmem:[%s428_s1 + $0xb8] sm:$0xff]  ;;  %v251_v1 = vld [vmem:[%s428_s1 + $0xb0] sm:$0xff]  ;;  %v250_v5 = vld [vmem:[%s428_s1 + $0xa8] sm:$0xff] }
   0x2   :  { %v236_v2 = vld [vmem:[%s428_s1 + $0x78] sm:$0xff]  ;;  %168 = vmatpush.msra.mxu2 %v252_v0  ;;  %v235_v4 = vld [vmem:[%s428_s1 + $0x70] sm:$0xff]  ;;  %v234_v7 = vld [vmem:[%s428_s1 + $0x68] sm:$0xff] }
   0x3   :  { %74 = vmatpush.msra.mxu0 %v236_v2  ;;  %v30_v3 = vld [vmem:[%s428_s1 + $0x38] sm:$0xff]  ;;  %257 = vmatpush.msra.mxu3 %v236_v2  ;;  %v29_v6 = vld [vmem:[%s428_s1 + $0x30] sm:$0xff]  ;;  %v28_v8 = vld [vmem:[%s428_s1 + $0x28] sm:$0xff] }
   0x4   :  { %111 = vmatpush.msra.mxu1 %v30_v3  ;;  %169 = vmatpush.msra.mxu2 %v251_v1  ;;  %v249_v9 = vld [vmem:[%s428_s1 + $0xa0] sm:$0xff]  ;;  %v248_v12 = vld [vmem:[%s428_s1 + $0x98] sm:$0xff]  ;;  %v18_v16 = vld [vmem:[%s429_s0 + $0x8] sm:$0xff] }
   0x5   :  { %75 = vmatpush.msra.mxu0 %v235_v4  ;;  %258 = vmatpush.msra.mxu3 %v235_v4  ;;  %v233_v10 = vld [vmem:[%s428_s1 + $0x60] sm:$0xff]  ;;  %v232_v13 = vld [vmem:[%s428_s1 + $0x58] sm:$0xff]  ;;  %v247_v17 = vld [vmem:[%s428_s1 + $0x90] sm:$0xff]  ;;  %v134_v21 = vrot.slane %v18_v16, 2  ;;  %v39_v26 = vrot.slane %v18_v16, 1 }
   0x6   :  { %112 = vmatpush.msra.mxu1 %v29_v6  ;;  %170 = vmatpush.msra.mxu2 %v250_v5  ;;  %v27_v11 = vld [vmem:[%s428_s1 + $0x20] sm:$0xff]  ;;  %v26_v15 = vld [vmem:[%s428_s1 + $0x18] sm:$0xff]  ;;  %v231_v18 = vld [vmem:[%s428_s1 + $0x50] sm:$0xff] }
   0x7   :  { %76 = vmatpush.msra.mxu0 %v234_v7  ;;  %259 = vmatpush.msra.mxu3 %v234_v7  ;;  %v17_v14 = vld [vmem:[%s429_s0] sm:$0xff]  ;;  %v25_v19 = vld [vmem:[%s428_s1 + $0x10] sm:$0xff]  ;;  %v246_v23 = vld [vmem:[%s428_s1 + $0x88] sm:$0xff] }
   0x8   :  { %113 = vmatpush.msra.mxu1 %v28_v8  ;;  %171 = vmatpush.msra.mxu2 %v249_v9  ;;  %v133_v20 = vrot.slane %v17_v14, 2  ;;  %v19_v22 = vld [vmem:[%s429_s0 + $0x10] sm:$0x3]  ;;  %v230_v24 = vld [vmem:[%s428_s1 + $0x48] sm:$0xff]  ;;  %v38_v25 = vrot.slane %v17_v14, 1  ;;  %v245_v28 = vld [vmem:[%s428_s1 + $0x80] sm:$0xff] }
   0x9   :  { %77 = vmatpush.msra.mxu0 %v233_v10  ;;  %260 = vmatpush.msra.mxu3 %v233_v10  ;;  %v24_v27 = vld [vmem:[%s428_s1 + $0x8] sm:$0xff]  ;;  %v229_v29 = vld [vmem:[%s428_s1 + $0x40] sm:$0xff]  ;;  %v41_v30 = vrot.slane %v19_v22, 1  ;;  %v136_v35 = vrot.slane %v19_v22, 2  ;;  %v20_v36 = vld [vmem:[%s429_s0 + $0x18] sm:$0xff] }
   0xa   :  { %114 = vmatpush.msra.mxu1 %v27_v11  ;;  %172 = vmatpush.msra.mxu2 %v248_v12  ;;  %v135_v31 = vsel %vm132_vm0, %v133_v20, %v134_v21  ;;  %v23_v32 = vld [vmem:[%s428_s1] sm:$0xff]  ;;  %v40_v33 = vsel %vm37_vm1, %v38_v25, %v39_v26  ;;  %v43_v38 = vrot.slane %v20_v36, 1  ;;  %v138_v42 = vrot.slane %v20_v36, 2  ;;  %v22_v44 = vld [vmem:[%s429_s0 + $0x28] sm:$0x3] }
   0xb   :  { %78 = vmatpush.msra.mxu0 %v232_v13  ;;  %261 = vmatpush.msra.mxu3 %v232_v13  ;;  %v42_v34 = vsel %vm37_vm1, %v39_v26, %v41_v30  ;;  %v21_v37 = vld [vmem:[%s429_s0 + $0x20] sm:$0xff]  ;;  %v137_v40 = vsel %vm132_vm0, %v134_v21, %v136_v35  ;;  %v46_v45 = vrot.slane %v22_v44, 1  ;;  %v141_v48 = vrot.slane %v22_v44, 2 }
   0xc   :  { %115 = vmatpush.msra.mxu1 %v26_v15  ;;  %173 = vmatpush.msra.mxu2 %v247_v17  ;;  %v44_v39 = vrot.slane %v21_v37, 1  ;;  %v139_v43 = vrot.slane %v21_v37, 2  ;;  %v265_v53 = vld [vmem:[%s430_s2] ss:$0 sm:$0xff]  ;;  %v267_v7 = vld [vmem:[%s430_s2 + $0x1] ss:$0 sm:$0xff] }
   0xd   :  { %79 = vmatpush.msra.mxu0 %v231_v18  ;;  %262 = vmatpush.msra.mxu3 %v231_v18  ;;  %v266_v56 = vld [vmem:[%s431_s3] ss:$0 sm:$0xff]  ;;  %v268_v10 = vld [vmem:[%s431_s3 + $0x1] ss:$0 sm:$0xff] }
   0xe   :  { %116 = vmatpush.msra.mxu1 %v25_v19  ;;  %174 = vmatpush.msra.mxu2 %v246_v23  ;;  %v45_v41 = vsel %vm37_vm1, %v43_v38, %v44_v39  ;;  %v140_v46 = vsel %vm132_vm0, %v138_v42, %v139_v43  ;;  %v47_v47 = vsel %vm37_vm1, %v44_v39, %v46_v45 }
   0xf   :  { %80 = vmatpush.msra.mxu0 %v230_v24  ;;  %263 = vmatpush.msra.mxu3 %v230_v24  ;;  %v142_v49 = vsel %vm132_vm0, %v139_v43, %v141_v48 }
  0x10   :  { %117 = vmatpush.msra.mxu1 %v24_v27  ;;  %175 = vmatpush.msra.mxu2 %v245_v28 }
  0x11   :  { %81 = vmatpush.msra.mxu0 %v229_v29  ;;  %253 = vmatmul.msk.f32.vlgmr.msra.gmra.mxu2 %vm57_vm2, %v135_v31 }
  0x12   :  { %118 = vmatpush.msra.mxu1 %v23_v32  ;;  %237 = vmatmul.msk.f32.vlgmr.msra.gmra.mxu0 %vm57_vm2, %v40_v33 }
  0x13   :  { %241 = vmatmul.msk.f32.vlgmr.msra.gmra.mxu1 %vm57_vm2, %v17_v14  ;;  %264 = vmatpush.msra.mxu3 %v229_v29 }
  0x14   :  { %238 = vmatmul.msk.f32.vlgmr.msra.gmra.mxu3 %vm57_vm2, %v42_v34 }
  0x19   :  { %254 = vmatmul.msk.f32.gmra.mxu2 %vm57_vm2, %v137_v40 }
  0x1b   :  { %242 = vmatmul.msk.f32.gmra.mxu1 %vm57_vm2, %v18_v16 }
  0x1c   :  { %239 = vmatmul.msk.f32.gmra.mxu3 %vm57_vm2, %v45_v41 }
  0x21   :  { %255 = vmatmul.msk.f32.gmra.mxu2 %vm57_vm2, %v140_v46 }
  0x23   :  { %243 = vmatmul.msk.f32.gmra.mxu1 %vm57_vm2, %v20_v36 }
  0x24   :  { %240 = vmatmul.msk.f32.gmra.mxu3 %vm57_vm2, %v47_v47 }
  0x29   :  { %256 = vmatmul.msk.f32.gmra.mxu2 %vm57_vm2, %v142_v49 }
  0x2b   :  { %244 = vmatmul.msk.f32.gmra.mxu1 %vm57_vm2, %v21_v37 }
  0x8f   :  { %v83_v50 = vpop.f32.mrf.mxu0 }
  0x90   :  { %v120_v51 = vpop.f32.mrf.mxu1 }
  0x91   :  { %v121_v52 = vadd.f32 %v120_v51, %v83_v50 }
  0x94   :  { %v177_v54 = vpop.f32.mrf.mxu2 }
  0x95   :  { %v189_v55 = vadd.f32 %v177_v54, %v121_v52 }
  0x97   :  { %v201_v57 = vmul.f32 %v265_v53, %v189_v55  ;;  %v86_v58 = vpop.f32.mrf.mxu3 }
  0x98   :  { %v123_v59 = vpop.f32.mrf.mxu1 }
  0x99   :  { %v213_v60 = vadd.f32 %v266_v56, %v201_v57  ;;  %v124_v61 = vadd.f32 %v123_v59, %v86_v58 }
  0x9b   :  { %v217_v62 = vmax.f32 %v213_v60, 0.0 }
  0x9c   :  { %v180_v63 = vpop.f32.mrf.mxu2 }
  0x9d   :  { %221 = vst [vmem:[%s432_s4] sm:$0xff] %v217_v62  ;;  %v190_v0 = vadd.f32 %v180_v63, %v124_v61 }
  0x9f   :  { %v202_v1 = vmul.f32 %v265_v53, %v190_v0  ;;  %v89_v2 = vpop.f32.mrf.mxu3 }
  0xa0   :  { %v126_v3 = vpop.f32.mrf.mxu1 }
  0xa1   :  { %v214_v4 = vadd.f32 %v266_v56, %v202_v1  ;;  %v127_v5 = vadd.f32 %v126_v3, %v89_v2 }
  0xa3   :  { %v218_v6 = vmax.f32 %v214_v4, 0.0 }
  0xa4   :  { %v183_v8 = vpop.f32.mrf.mxu2 }
  0xa5   :  { %222 = vst [vmem:[%s432_s4 + $0x8] sm:$0xff] %v218_v6  ;;  %v191_v9 = vadd.f32 %v183_v8, %v127_v5 }
  0xa7   :  { %v203_v11 = vmul.f32 %v267_v7, %v191_v9  ;;  %v92_v12 = vpop.f32.mrf.mxu3 }
  0xa8   :  { %v129_v13 = vpop.f32.mrf.mxu1 }
  0xa9   :  { %v215_v14 = vadd.f32 %v268_v10, %v203_v11  ;;  %v130_v15 = vadd.f32 %v129_v13, %v92_v12 }
  0xab   :  { %v219_v16 = vmax.f32 %v215_v14, 0.0 }
  0xac   :  { %v186_v17 = vpop.f32.mrf.mxu2 }
  0xad   :  { %223 = vst [vmem:[%s432_s4 + $0x10] sm:$0xff] %v219_v16  ;;  %v192_v18 = vadd.f32 %v186_v17, %v130_v15 }
  0xaf   :  { %v204_v19 = vmul.f32 %v267_v7, %v192_v18 }
  0xb1   :  { %v216_v20 = vadd.f32 %v268_v10, %v204_v19 }
  0xb3   :  { %v220_v21 = vmax.f32 %v216_v20, 0.0 }
  0xb5   :  { %224 = vst [vmem:[%s432_s4 + $0x18] sm:$0xff] %v220_v21 }

</bundles_post_ra>
